<compile_context>
chip_gen: v6e
topology: v6e:2x2x1
jax: 0.10.0
libtpu: 0.0.40
codegen_flags: <defaults>
</compile_context>

<pallas_src>
import functools

import jax
import jax.numpy as jnp
from jax.experimental import pallas as pl
from jax.experimental.pallas import tpu as pltpu

LANES = 128
SUBLANES = 8

# murmur3 fmix32 constants and golden-ratio seed mixing constants.
_FMIX_C1 = 0x85EBCA6B
_FMIX_C2 = 0xC2B2AE35
_GOLDEN = 0x9E3779B9
_SEED_C = 0x7F4A7C15


def _i32(v):
    """Map a Python int to its int32 (two's-complement) representative."""
    v &= 0xFFFFFFFF
    return v - (1 << 32) if v >= (1 << 31) else v


def _round_up(a, b):
    return (a + b - 1) // b * b


def _mc_dropout_kernel(seed_ref, x_ref, o_ref, *, threshold, scale, tile_rows):
    shape = x_ref.shape  # (tile_rows, LANES)

    # Unique 32-bit counter per element of the (padded) flattened array.
    row = jax.lax.broadcasted_iota(jnp.int32, shape, 0)
    lane = jax.lax.broadcasted_iota(jnp.int32, shape, 1)
    base = pl.program_id(0) * (tile_rows * LANES)          # scalar int32
    idx = ((row << 7) | lane) + base                       # global element id

    # Non-linear seed mix (scalar-unit math, effectively free).
    key = seed_ref[0] * jnp.int32(_i32(_GOLDEN)) + jnp.int32(_i32(_SEED_C))

    # murmur3 fmix32: full-avalanche hash of (index, seed) -> uniform uint32.
    h = idx.astype(jnp.uint32) ^ key.astype(jnp.uint32)
    h = h ^ (h >> 16)
    h = h * jnp.uint32(_FMIX_C1)
    h = h ^ (h >> 13)
    h = h * jnp.uint32(_FMIX_C2)
    h = h ^ (h >> 16)

    # Integer-threshold Bernoulli: drop iff h < floor(p * 2**32).
    keep = h >= jnp.uint32(threshold)

    x = x_ref[...]
    # Compute in the input dtype (no f32 round-trip for bf16 inputs).
    # TODO(synk): for bf16/fp8 inputs, derive 2/4 keep decisions per random
    # word to cut hash work (matters on v7x for narrow dtypes).
    scaled = x * jnp.asarray(scale, dtype=x.dtype)
    o_ref[...] = jnp.where(keep, scaled, jnp.zeros((), dtype=x.dtype))


def mc_dropout(x, p, seed, *, tile_rows=2048, donate_input=False):
    """Monte-Carlo dropout: always drops with prob p, survivors scaled 1/(1-p).

    Matches nn.functional.dropout(x, p, training=True) semantics (mask RNG
    stream differs from PyTorch). Assumes x.size < 2**31 elements.
    Set donate_input=True only if the caller will not reuse x afterwards.
    """
    p = float(p)
    if p <= 0.0:
        return x
    if p >= 1.0:
        return jnp.zeros_like(x)

    orig_shape = x.shape
    dtype = x.dtype
    total = int(x.size)
    itemsize = jnp.dtype(dtype).itemsize

    rows = pl.cdiv(total, LANES)

    # Tile sizing: big blocks to approach the HBM roofline, capped so the
    # pipelined footprint (in + out, double-buffered ~= 4x block) stays
    # <= ~16 MiB per core (fits v7x's 64 MiB VMEM with both TCs active).
    max_tile_rows = (16 * 1024 * 1024) // (4 * LANES * itemsize)
    tr = max(SUBLANES,
             (min(int(tile_rows), int(max_tile_rows)) // SUBLANES) * SUBLANES)
    tr = min(tr, _round_up(rows, SUBLANES))

    padded_rows = _round_up(rows, tr)
    grid = padded_rows // tr
    pad = padded_rows * LANES - total

    flat = x.reshape(-1)
    if pad:
        flat = jnp.pad(flat, (0, pad))
    x2d = flat.reshape(padded_rows, LANES)

    seed_arr = jnp.asarray([_i32(int(seed))], dtype=jnp.int32)

    threshold = min(max(int(round(p * 4294967296.0)), 0), 4294967295)
    scale = 1.0 / (1.0 - p)

    block_bytes = tr * LANES * itemsize
    vmem_limit = int(min(max(4 * block_bytes + (4 << 20), 16 << 20), 64 << 20))

    kernel = functools.partial(
        _mc_dropout_kernel, threshold=threshold, scale=scale, tile_rows=tr)

    # x2d is operand index 1 (after the scalar-prefetch seed); alias it to the
    # output only when the caller promises not to reuse the input.
    aliases = {1: 0} if donate_input else {}

    out2d = pl.pallas_call(
        kernel,
        out_shape=jax.ShapeDtypeStruct((padded_rows, LANES), dtype),
        grid_spec=pltpu.PrefetchScalarGridSpec(
            num_scalar_prefetch=1,
            grid=(grid,),
            in_specs=[pl.BlockSpec((tr, LANES), lambda i, s: (i, 0))],
            out_specs=pl.BlockSpec((tr, LANES), lambda i, s: (i, 0)),
        ),
        compiler_params=pltpu.CompilerParams(
            # Tiles are fully independent (stateless per-element hash), so the
            # grid can be sharded across v7x's two TensorCores.
            dimension_semantics=("parallel",),
            vmem_limit_bytes=vmem_limit,
        ),
        input_output_aliases=aliases,
    )(seed_arr, x2d)

    out = out2d.reshape(-1)
    if pad:
        out = out[:total]
    return out.reshape(orig_shape)


if __name__ == "__main__":
    key = jax.random.PRNGKey(0)
    # NCHW input, consistent with a conv-net feature map.
    x = jax.random.normal(key, (2, 4, 16, 16), dtype=jnp.float32)
    p = 0.5

    y = mc_dropout(x, p, seed=1234)
    y = jax.block_until_ready(y)

    # Sanity checks on dropout semantics (not RNG-matched to PyTorch).
    assert y.shape == x.shape and y.dtype == x.dtype
    zero_frac = float(jnp.mean(y == 0.0))
    nz = y != 0.0
    max_err = float(jnp.max(jnp.abs(jnp.where(nz, y - x / (1.0 - p), 0.0))))
    assert 0.3 < zero_frac < 0.7, f"unexpected drop fraction {zero_frac}"
    assert max_err < 1e-5, f"scaling error {max_err}"

    print("KERNEL_OK")
</pallas_src>

<mosaic_0001>
module attributes {stable_mosaic.version = 11 : i64} {
  func.func @_mc_dropout_kernel(%arg0: i32, %arg1: memref<1xi32, #tpu.memory_space<smem>>, %arg2: memref<16x128xf32, #tpu.memory_space<vmem>>, %arg3: memref<16x128xf32, #tpu.memory_space<vmem>>) attributes {dimension_semantics = [#tpu.dimension_semantics<parallel>], iteration_bounds = array<i64: 1>, scalar_prefetch = 1 : i64, scratch_operands = 0 : i64, tpu.core_type = #tpu.core_type<tc>, window_params = [{transform_indices = @transform_0, window_bounds = array<i64: 16, 128>}, {transform_indices = @transform_1, window_bounds = array<i64: 16, 128>}]} {
    %0 = tpu.iota {dimensions = array<i32: 0>} : vector<16x128xi32>
    %1 = tpu.iota {dimensions = array<i32: 1>} : vector<16x128xi32>
    %c2048_i32 = arith.constant 2048 : i32
    %2 = arith.muli %arg0, %c2048_i32 : i32
    %c7_i32 = arith.constant 7 : i32
    %3 = vector.broadcast %c7_i32 : i32 to vector<16x128xi32>
    %4 = arith.shli %0, %3 : vector<16x128xi32>
    %5 = arith.ori %4, %1 : vector<16x128xi32>
    %6 = vector.broadcast %2 : i32 to vector<16x128xi32>
    %7 = arith.addi %5, %6 : vector<16x128xi32>
    %c0 = arith.constant 0 : index
    %8 = memref.load %arg1[%c0] : memref<1xi32, #tpu.memory_space<smem>>
    %c-1640531527_i32 = arith.constant -1640531527 : i32
    %9 = arith.muli %8, %c-1640531527_i32 : i32
    %c2135587861_i32 = arith.constant 2135587861 : i32
    %10 = arith.addi %9, %c2135587861_i32 : i32
    %11 = vector.broadcast %10 : i32 to vector<16x128xi32>
    %12 = arith.xori %7, %11 : vector<16x128xi32>
    %c16_i32 = arith.constant 16 : i32
    %13 = vector.broadcast %c16_i32 : i32 to vector<16x128xi32>
    %14 = arith.shrui %12, %13 : vector<16x128xi32>
    %15 = arith.xori %12, %14 : vector<16x128xi32>
    %c-2048144789_i32 = arith.constant -2048144789 : i32
    %16 = vector.broadcast %c-2048144789_i32 : i32 to vector<16x128xi32>
    %17 = arith.muli %15, %16 : vector<16x128xi32>
    %c13_i32 = arith.constant 13 : i32
    %18 = vector.broadcast %c13_i32 : i32 to vector<16x128xi32>
    %19 = arith.shrui %17, %18 : vector<16x128xi32>
    %20 = arith.xori %17, %19 : vector<16x128xi32>
    %c-1028477387_i32 = arith.constant -1028477387 : i32
    %21 = vector.broadcast %c-1028477387_i32 : i32 to vector<16x128xi32>
    %22 = arith.muli %20, %21 : vector<16x128xi32>
    %c16_i32_0 = arith.constant 16 : i32
    %23 = vector.broadcast %c16_i32_0 : i32 to vector<16x128xi32>
    %24 = arith.shrui %22, %23 : vector<16x128xi32>
    %25 = arith.xori %22, %24 : vector<16x128xi32>
    %c-2147483648_i32 = arith.constant -2147483648 : i32
    %26 = vector.broadcast %c-2147483648_i32 : i32 to vector<16x128xi32>
    %27 = arith.cmpi uge, %25, %26 : vector<16x128xi32>
    %c0_1 = arith.constant 0 : index
    %c0_2 = arith.constant 0 : index
    %28 = vector.load %arg2[%c0_1, %c0_2] : memref<16x128xf32, #tpu.memory_space<vmem>>, vector<16x128xf32>
    %cst = arith.constant 2.000000e+00 : f32
    %29 = vector.broadcast %cst : f32 to vector<16x128xf32>
    %30 = arith.mulf %28, %29 : vector<16x128xf32>
    %cst_3 = arith.constant 0.000000e+00 : f32
    %31 = vector.broadcast %cst_3 : f32 to vector<16x128xf32>
    %32 = arith.select %27, %30, %31 : vector<16x128xi1>, vector<16x128xf32>
    %c0_4 = arith.constant 0 : index
    %c0_5 = arith.constant 0 : index
    %33 = vector.load %arg3[%c0_4, %c0_5] : memref<16x128xf32, #tpu.memory_space<vmem>>, vector<16x128xf32>
    tpu.vector_store %arg3[%c0_4, %c0_5], %32 {strides = array<i32>} : memref<16x128xf32, #tpu.memory_space<vmem>>, vector<16x128xf32>,
    return
  }
  func.func @transform_0(%arg0: i32, %arg1: memref<1xi32, #tpu.memory_space<smem>>) -> (i32, i32) {
    %c0_i32 = arith.constant 0 : i32
    %c0_i32_0 = arith.constant 0 : i32
    return %arg0, %c0_i32 : i32, i32
  }
  func.func @transform_1(%arg0: i32, %arg1: memref<1xi32, #tpu.memory_space<smem>>) -> (i32, i32) {
    %c0_i32 = arith.constant 0 : i32
    %c0_i32_0 = arith.constant 0 : i32
    return %arg0, %c0_i32 : i32, i32
  }
}

</mosaic_0001>

<bundles_post_ra>
// kernel: tpu_custom_call.1
= control target key start
LH: loop header
LB: loop body
LE: loop exit
PB: predicated region body
PF: predicated region fallthrough
CT: control target
= control target key end

     0   :  { %8 = vsyncpa [#allocation5], 0  ;;  %s169_s0 = inlined_call_operand.<no memory space> [shape: s32[1], index: 0, kind: input, shape index: {}]   ;;  %s170_s1 = inlined_call_operand.hbm [shape: f32[16,128], index: 1, kind: input, shape index: {}]   ;;  %s171_s2 = inlined_call_operand.hbm [shape: f32[16,128], index: 2, kind: output, shape index: {}]  }
   0x1   :  { %9 = vsyncpa [#allocation6], 0  ;;  %s135_s9 = smov [#allocation4]  }
   0x2   :  { %s15_s10 = sshll.u32 %s135_s9, 4  ;;  %s16_s10 = int_to_ptr.vmem [resolvable:$true] %s15_s10 }
   0x3   :  { %s99_s11 = scalar_lea.vmem %s16_s10, 256  ;;  %p104_p1 = scmp.lt.s32.totalorder %s16_s10, %s16_s10 }
   0x4   :  { %p100_p0 = scmp.ne.s32.totalorder %s16_s10, %s99_s11  ;;  %p105_p2 = scmp.lt.s32.totalorder %s99_s11, %s99_s11 }
   0x6   :  { %p106_p3 = por %p105_p2, %p104_p1 }
   0x8   :  { %p107_p4 = pnand %p106_p3, %p100_p0 }
   0xa   :  { %110 = shalt.err (!%p107_p4)
}
   0xb   :  { %s136_s12 = smov 128   ;;  %s137_s13 = smov 8  }
   0xc   :  { %21 = dma.hbm_to_vmem [thread:$0]  %s170_s1, 256, %s16_s10, [#allocation5], %s136_s12, %s136_s12, %s137_s13  }
   0xd   :  { %131 = dma.done.wait [#allocation5], 256  }
   0xe   :  { %132 = vsyncadd [#allocation5], 4294967040  ;;  %v25_v0 = vlaneseq  ;;  %s39_s18 = smul.u32 2654435769, %s169_s0  ;;  %v62_v21 = vld [vmem:[#allocation4] sm:$0xff]  ;;  %v63_v25 = vld [vmem:[#allocation4 + $0x8] sm:$0xff] }
   0xf   :  { %v64_v26 = vmul.f32 2.0, %v62_v21  ;;  %v65_v29 = vmul.f32 2.0, %v63_v25  ;;  %s138_s0 = smov [#allocation7]  }
  0x10   :  { %v26_v1 = vshrl.u32 %v25_v0, 7  ;;  %v29_v2 = vand.u32 127, %v25_v0  ;;  %s40_s19 = sadd.s32 2135587861, %s39_s18  ;;  %s75_s1 = sshll.u32 %s138_s0, 4  ;;  %s76_s1 = int_to_ptr.vmem [resolvable:$true] %s75_s1 }
  0x11   :  { %v41_v5 = vstv %s40_s19  ;;  %s111_s20 = scalar_lea.vmem %s76_s1, 256  ;;  %p116_p6 = scmp.lt.s32.totalorder %s76_s1, %s76_s1 }
  0x12   :  { %v31_v3 = vshll.u32 %v26_v1, 7  ;;  %v27_v4 = vadd.s32 8, %v26_v1  ;;  %p112_p5 = scmp.ne.s32.totalorder %s76_s1, %s111_s20  ;;  %p117_p7 = scmp.lt.s32.totalorder %s111_s20, %s111_s20 }
  0x14   :  { %v33_v6 = vor.u32 %v31_v3, %v29_v2  ;;  %v32_v7 = vshll.u32 %v27_v4, 7  ;;  %p118_p8 = por %p117_p7, %p116_p6 }
  0x16   :  { %v42_v8 = vxor.u32 %v41_v5, %v33_v6  ;;  %v34_v9 = vor.u32 %v32_v7, %v29_v2  ;;  %p119_p9 = pnand %p118_p8, %p112_p5 }
  0x18   :  { %v44_v10 = vshrl.u32 %v42_v8, 16  ;;  %v43_v11 = vxor.u32 %v41_v5, %v34_v9 }
  0x1a   :  { %v46_v12 = vxor.u32 %v44_v10, %v42_v8  ;;  %v45_v13 = vshrl.u32 %v43_v11, 16 }
  0x1c   :  { %v48_v14 = vmul.u32 2246822507, %v46_v12  ;;  %v47_v15 = vxor.u32 %v45_v13, %v43_v11 }
  0x1e   :  { %v50_v16 = vshrl.u32 %v48_v14, 13  ;;  %v49_v17 = vmul.u32 2246822507, %v47_v15 }
  0x20   :  { %v52_v18 = vxor.u32 %v50_v16, %v48_v14  ;;  %v51_v19 = vshrl.u32 %v49_v17, 13 }
  0x22   :  { %v54_v20 = vmul.u32 3266489909, %v52_v18  ;;  %v53_v22 = vxor.u32 %v51_v19, %v49_v17 }
  0x24   :  { %v56_v23 = vshrl.u32 %v54_v20, 16  ;;  %v55_v24 = vmul.u32 3266489909, %v53_v22 }
  0x26   :  { %v58_v27 = vxor.u32 %v56_v23, %v54_v20  ;;  %v57_v28 = vshrl.u32 %v55_v24, 16 }
  0x28   :  { %vm60_vm0 = vcmp.ge.u32.totalorder %v58_v27, 2147483648  ;;  %v59_v30 = vxor.u32 %v57_v28, %v55_v24 }
  0x29   :  { %v66_v31 = vsel %vm60_vm0, %v64_v26, 0.0 }
  0x2a   :  { %68 = vst [vmem:[#allocation7] sm:$0xff] %v66_v31  ;;  %vm61_vm1 = vcmp.ge.u32.totalorder %v59_v30, 2147483648 }
  0x2b   :  { %v67_v32 = vsel %vm61_vm1, %v65_v29, 0.0 }
  0x2c   :  { %69 = vst [vmem:[#allocation7 + $0x8] sm:$0xff] %v67_v32 }
  0x2d   :  { %122 = shalt.err (!%p119_p9)
}
  0x2e   :  { %81 = dma.vmem_to_hbm [thread:$0]  %s76_s1, 256, %s171_s2, [#allocation6], %s136_s12, %s136_s12, %s137_s13  }
  0x2f   :  { %133 = dma.done.wait [#allocation6], 256  }
  0x30   :  { %134 = vsyncadd [#allocation6], 4294967040 }
  0x31   :  { %85 = vsyncpa [#allocation5], 1 }
  0x32   :  { %86 = vsyncpa [#allocation6], 1 }

</bundles_post_ra>
